<compile_context>
chip_gen: v5e
topology: v5e:2x2
jax: 0.10.0
libtpu: 0.0.40
codegen_flags: <defaults>
</compile_context>

<pallas_src>
import functools
import math

import jax
import jax.numpy as jnp
from jax import lax
from jax.experimental import pallas as pl
from jax.experimental.pallas import tpu as pltpu


def self_attention_kernel(x_ref, wqkv_ref, bqkv_ref, o_ref, *, h, mxu_dtype):
    """One grid step processes `block_b` batch rows.

    x_ref    : (Bblk, S, H)     VMEM tile of lstm_output (f32)
    wqkv_ref : (H, 3*Hp)        fused, pre-transposed, lane-padded, pre-scaled
                                [Wq.T/sqrt(H) | Wk.T | Wv.T]  (mxu_dtype)
    bqkv_ref : (1, 3*Hp)        fused, lane-padded biases [bq/sqrt(H)|bk|bv] (f32)
    o_ref    : (Bblk, S, Hp)    lane-dense output tile (pad sliced off by wrapper)
    """
    bblk, s, _ = x_ref.shape
    hp = o_ref.shape[-1]                       # lane-aligned per-projection stride

    # Fused Q/K/V projection as a single 2-D matmul: M = Bblk*S rows fills the
    # MXU M dimension (leading-dim merge is a layout no-op, S is a sublane tile).
    x2d = x_ref[...].reshape(bblk * s, h).astype(mxu_dtype)
    qkv = jnp.dot(x2d, wqkv_ref[...],
                  preferred_element_type=jnp.float32) + bqkv_ref[...]
    qkv = qkv.reshape(bblk, s, 3 * hp)

    # 128-lane-aligned slices (padded columns are exact zeros, so contractions
    # over Hp equal contractions over H).  Softmax scale already folded into Wq.
    q = qkv[..., 0 * hp:1 * hp].astype(mxu_dtype)
    k = qkv[..., 1 * hp:2 * hp].astype(mxu_dtype)
    v = qkv[..., 2 * hp:3 * hp].astype(mxu_dtype)

    # scores = (Q/sqrt(H)) K^T  -- batched contraction on the feature dim,
    # no materialized transpose.
    scores = lax.dot_general(q, k,
                             dimension_numbers=(((2,), (2,)), ((0,), (0,))),
                             preferred_element_type=jnp.float32)   # (Bblk,S,S)

    # Numerically-stable softmax, all elementwise math in f32 (v5e-safe).
    scores = scores - jnp.max(scores, axis=-1, keepdims=True)
    p = jnp.exp(scores)
    denom = jnp.sum(p, axis=-1, keepdims=True)
    p = p * pl.reciprocal(denom, approx=False)        # exact: only Bblk*S recips

    # attention_output = P @ V (batched), f32 accumulation, lane-dense store.
    out = lax.dot_general(p.astype(mxu_dtype), v,
                          dimension_numbers=(((2,), (1,)), ((0,), (0,))),
                          preferred_element_type=jnp.float32)      # (Bblk,S,Hp)
    o_ref[...] = out.astype(o_ref.dtype)


def _round_up(x, m):
    return ((x + m - 1) // m) * m


def _vmem_capacity_bytes():
    """Physical VMEM per TensorCore; conservative (v7x) fallback."""
    try:
        info = pltpu.get_tpu_info()
        cap = int(getattr(info, "vmem_capacity_bytes"))
        if cap > 0:
            return cap
    except Exception:
        pass
    return 64 * 1024 * 1024


def _step_vmem_bytes(bb, S, H, Hp, w_bytes):
    """Per-grid-step VMEM working set, incl. 2x pipelining buffers."""
    f32 = 4
    x_blk = bb * S * H * f32
    o_blk = bb * S * Hp * f32
    w_blk = H * 3 * Hp * w_bytes
    b_blk = 3 * Hp * f32
    # temporaries (single-buffered): qkv f32 + casted q/k/v, scores + p, out f32
    tmp = (bb * S * 3 * Hp * (f32 + w_bytes)
           + 2 * bb * S * S * f32
           + bb * S * Hp * f32)
    return 2 * (x_blk + o_blk + w_blk + b_blk) + tmp


def _pick_block_b(B, S, H, Hp, w_bytes, vmem_budget, min_grid_steps=2):
    """Pick the batch block size.

    Criteria: fit the VMEM budget; keep >= `min_grid_steps` grid steps when
    possible (v7x has 2 TensorCores that are fed via the "parallel" grid axis;
    an extra step costs only ~0.35 us on 1-TC chips); and make block_b*S reach
    >= 128 MXU rows with the smallest block that does so.
    """
    divisors = [d for d in range(1, B + 1) if B % d == 0]
    fitting = [d for d in divisors
               if _step_vmem_bytes(d, S, H, Hp, w_bytes) <= vmem_budget] or [1]
    multi = [d for d in fitting if B // d >= min_grid_steps]
    full_m = [d for d in multi if d * S >= 128]
    if full_m:
        return min(full_m)          # fills MXU M and keeps max parallel steps
    if multi:
        return max(multi)           # can't fill M: biggest block with >=2 steps
    return max(fitting)


def self_attention(lstm_output, wq, wk, wv, bq, bk, bv,
                   *, block_b=None, mxu_dtype=jnp.bfloat16):
    """Pallas SelfAttention. lstm_output: (B, S, H) float32; weights (H, H) / (H,).

    mxu_dtype=bfloat16 (default): native MXU rate, f32 accumulation, ~1e-2 accuracy.
    mxu_dtype=float32: full-precision MXU emulation, matches the reference ~1e-6.
    """
    B, S, H = lstm_output.shape
    Hp = max(_round_up(H, 128), 128)      # lane-aligned per-projection stride
    scale = 1.0 / math.sqrt(H)

    def pad_cols(w_t):                    # (H, H) -> (H, Hp), zero-padded columns
        return jnp.pad(w_t, ((0, 0), (0, Hp - H)))

    def pad_bias(b):                      # (H,) -> (Hp,)
        return jnp.pad(b, (0, Hp - H))

    # Fuse + pre-transpose + fold the softmax scale into Wq / bq (done once).
    wqkv = jnp.concatenate(
        [pad_cols(wq.T * scale), pad_cols(wk.T), pad_cols(wv.T)],
        axis=1).astype(mxu_dtype)                                  # (H, 3*Hp)
    bqkv = jnp.concatenate(
        [pad_bias(bq * scale), pad_bias(bk), pad_bias(bv)]
    ).reshape(1, 3 * Hp).astype(jnp.float32)                       # (1, 3*Hp)

    vmem_cap = _vmem_capacity_bytes()
    w_bytes = jnp.dtype(mxu_dtype).itemsize
    if block_b is None:
        block_b = _pick_block_b(B, S, H, Hp, w_bytes, vmem_budget=vmem_cap // 2)
    assert B % block_b == 0, "block_b must divide B"
    grid = (B // block_b,)

    # Explicit scoped-VMEM limit: above the 16 MiB v5e default, up to ~96 MiB on
    # v6e (128 MiB physical), and <= 3/4 of v7x's 64 MiB physical VMEM.
    vmem_limit = int(max(16 * 1024 * 1024,
                         min(vmem_cap * 3 // 4, 96 * 1024 * 1024)))

    # Advisory cost estimate for XLA's scheduler.
    flops = 2 * B * S * H * (3 * Hp) + 2 * 2 * B * S * S * Hp
    transcendentals = B * S * S
    bytes_accessed = (lstm_output.size * 4 + wqkv.size * w_bytes
                      + bqkv.size * 4 + B * S * Hp * 4)

    grid_spec = pltpu.PrefetchScalarGridSpec(
        num_scalar_prefetch=0,
        grid=grid,
        in_specs=[
            pl.BlockSpec((block_b, S, H), lambda b: (b, 0, 0)),    # x block
            pl.BlockSpec((H, 3 * Hp), lambda b: (0, 0)),           # fused Wqkv
            pl.BlockSpec((1, 3 * Hp), lambda b: (0, 0)),           # fused bias
        ],
        out_specs=pl.BlockSpec((block_b, S, Hp), lambda b: (b, 0, 0)),
    )

    kernel = functools.partial(self_attention_kernel, h=H, mxu_dtype=mxu_dtype)

    out_padded = pl.pallas_call(
        kernel,
        out_shape=jax.ShapeDtypeStruct((B, S, Hp), lstm_output.dtype),
        grid_spec=grid_spec,
        compiler_params=pltpu.CompilerParams(
            dimension_semantics=("parallel",),      # batch blocks shard across TCs
            vmem_limit_bytes=vmem_limit,
        ),
        cost_estimate=pl.CostEstimate(
            flops=flops,
            transcendentals=transcendentals,
            bytes_accessed=bytes_accessed,
        ),
    )(lstm_output, wqkv, bqkv)

    return out_padded if Hp == H else out_padded[..., :H]


def self_attention_ref(x, wq, wk, wv, bq, bk, bv):
    """Pure-JAX reference mirroring the PyTorch forward (full f32 precision)."""
    h = x.shape[-1]
    hi = lax.Precision.HIGHEST
    q = jnp.einsum("bsh,oh->bso", x, wq, precision=hi) + bq
    k = jnp.einsum("bsh,oh->bso", x, wk, precision=hi) + bk
    v = jnp.einsum("bsh,oh->bso", x, wv, precision=hi) + bv
    scores = jnp.einsum("bqd,bkd->bqk", q, k, precision=hi) / math.sqrt(h)
    p = jax.nn.softmax(scores, axis=-1)
    return jnp.einsum("bqk,bkd->bqd", p, v, precision=hi)


if __name__ == "__main__":
    B, S, H = 2, 8, 32  # batch, seq, hidden_dim

    key = jax.random.PRNGKey(0)
    kx, kq, kk, kv, kbq, kbk, kbv = jax.random.split(key, 7)

    # Deterministic synthetic parameters (nn.Linear(hidden_dim, hidden_dim) shapes).
    bound = 1.0 / math.sqrt(H)
    x = jax.random.normal(kx, (B, S, H), dtype=jnp.float32)
    wq = jax.random.uniform(kq, (H, H), minval=-bound, maxval=bound, dtype=jnp.float32)
    wk = jax.random.uniform(kk, (H, H), minval=-bound, maxval=bound, dtype=jnp.float32)
    wv = jax.random.uniform(kv, (H, H), minval=-bound, maxval=bound, dtype=jnp.float32)
    bq = jax.random.uniform(kbq, (H,), minval=-bound, maxval=bound, dtype=jnp.float32)
    bk = jax.random.uniform(kbk, (H,), minval=-bound, maxval=bound, dtype=jnp.float32)
    bv = jax.random.uniform(kbv, (H,), minval=-bound, maxval=bound, dtype=jnp.float32)

    ref = self_attention_ref(x, wq, wk, wv, bq, bk, bv)

    # Default path: bf16 MXU operands, f32 accumulation (native MXU rate).
    out_bf16 = jax.block_until_ready(self_attention(x, wq, wk, wv, bq, bk, bv))
    assert out_bf16.shape == (B, S, H)
    assert jnp.allclose(out_bf16, ref, atol=3e-2, rtol=3e-2), "bf16 path mismatch"

    # Full-f32 MXU path: tight tolerance against the high-precision reference.
    out_f32 = jax.block_until_ready(
        self_attention(x, wq, wk, wv, bq, bk, bv, mxu_dtype=jnp.float32))
    assert out_f32.shape == (B, S, H)
    assert jnp.allclose(out_f32, ref, atol=1e-5, rtol=1e-5), "f32 path mismatch"

    print("KERNEL_OK")
</pallas_src>

<mosaic_0001>
module attributes {stable_mosaic.version = 11 : i64} {
  func.func @self_attention_kernel(%arg0: i32, %arg1: memref<1x8x32xf32, #tpu.memory_space<vmem>>, %arg2: memref<32x384xbf16, #tpu.memory_space<vmem>>, %arg3: memref<1x384xf32, #tpu.memory_space<vmem>>, %arg4: memref<1x8x128xf32, #tpu.memory_space<vmem>>) attributes {dimension_semantics = [#tpu.dimension_semantics<parallel>], iteration_bounds = array<i64: 2>, scalar_prefetch = 0 : i64, scratch_operands = 0 : i64, tpu.core_type = #tpu.core_type<tc>, window_params = [{transform_indices = @transform_0, window_bounds = array<i64: 1, 8, 32>}, {pipeline_mode = #tpu.pipeline_mode<synchronous>, transform_indices = @transform_1, window_bounds = array<i64: 32, 384>}, {pipeline_mode = #tpu.pipeline_mode<synchronous>, transform_indices = @transform_2, window_bounds = array<i64: 1, 384>}, {transform_indices = @transform_3, window_bounds = array<i64: 1, 8, 128>}]} {
    %c0 = arith.constant 0 : index
    %c0_0 = arith.constant 0 : index
    %c0_1 = arith.constant 0 : index
    %0 = vector.load %arg1[%c0, %c0_0, %c0_1] : memref<1x8x32xf32, #tpu.memory_space<vmem>>, vector<1x8x32xf32>
    %1 = vector.shape_cast %0 : vector<1x8x32xf32> to vector<8x32xf32>
    %2 = arith.truncf %1 : vector<8x32xf32> to vector<8x32xbf16>
    %c0_2 = arith.constant 0 : index
    %c0_3 = arith.constant 0 : index
    %3 = vector.load %arg2[%c0_2, %c0_3] : memref<32x384xbf16, #tpu.memory_space<vmem>>, vector<32x384xbf16>
    %cst = arith.constant dense<0.000000e+00> : vector<8x384xf32>
    %4 = tpu.matmul %2, %3, %cst {dimension_numbers = #tpu.dot_dimension_numbers<[1], [0], [0], [1], [0, 0, 1, 1], [], []>} : vector<8x32xbf16>, vector<32x384xbf16>, vector<8x384xf32> -> vector<8x384xf32>
    %c0_4 = arith.constant 0 : index
    %c0_5 = arith.constant 0 : index
    %5 = vector.load %arg3[%c0_4, %c0_5] : memref<1x384xf32, #tpu.memory_space<vmem>>, vector<1x384xf32>
    %6 = vector.broadcast %5 : vector<1x384xf32> to vector<8x384xf32>
    %7 = arith.addf %4, %6 : vector<8x384xf32>
    %8 = vector.shape_cast %7 : vector<8x384xf32> to vector<1x8x384xf32>
    %9 = vector.extract_strided_slice %8 {offsets = [0, 0, 0], sizes = [1, 8, 128], strides = [1, 1, 1]} : vector<1x8x384xf32> to vector<1x8x128xf32>
    %10 = arith.truncf %9 : vector<1x8x128xf32> to vector<1x8x128xbf16>
    %11 = vector.extract_strided_slice %8 {offsets = [0, 0, 128], sizes = [1, 8, 128], strides = [1, 1, 1]} : vector<1x8x384xf32> to vector<1x8x128xf32>
    %12 = arith.truncf %11 : vector<1x8x128xf32> to vector<1x8x128xbf16>
    %13 = vector.extract_strided_slice %8 {offsets = [0, 0, 256], sizes = [1, 8, 128], strides = [1, 1, 1]} : vector<1x8x384xf32> to vector<1x8x128xf32>
    %14 = arith.truncf %13 : vector<1x8x128xf32> to vector<1x8x128xbf16>
    %cst_6 = arith.constant dense<0.000000e+00> : vector<1x8x8xf32>
    %15 = tpu.matmul %10, %12, %cst_6 {dimension_numbers = #tpu.dot_dimension_numbers<[2], [2], [1], [1], [0, 0, 0, 1, 1, 1], [0], [0]>} : vector<1x8x128xbf16>, vector<1x8x128xbf16>, vector<1x8x8xf32> -> vector<1x8x8xf32>
    %cst_7 = arith.constant dense<0xFF800000> : vector<1x8xf32>
    %16 = vector.multi_reduction <maximumf>, %15, %cst_7 [2] : vector<1x8x8xf32> to vector<1x8xf32>
    %17 = vector.shape_cast %16 : vector<1x8xf32> to vector<1x8x1xf32>
    %18 = vector.broadcast %17 : vector<1x8x1xf32> to vector<1x8x8xf32>
    %19 = arith.subf %15, %18 : vector<1x8x8xf32>
    %20 = math.exp %19 : vector<1x8x8xf32>
    %cst_8 = arith.constant dense<0.000000e+00> : vector<1x8xf32>
    %21 = vector.multi_reduction <add>, %20, %cst_8 [2] : vector<1x8x8xf32> to vector<1x8xf32>
    %22 = vector.shape_cast %21 : vector<1x8xf32> to vector<1x8x1xf32>
    %23 = tpu.reciprocal %22 : vector<1x8x1xf32> -> vector<1x8x1xf32>
    %24 = vector.broadcast %23 : vector<1x8x1xf32> to vector<1x8x8xf32>
    %25 = arith.mulf %20, %24 : vector<1x8x8xf32>
    %26 = arith.truncf %25 : vector<1x8x8xf32> to vector<1x8x8xbf16>
    %cst_9 = arith.constant dense<0.000000e+00> : vector<1x8x128xf32>
    %27 = tpu.matmul %26, %14, %cst_9 {dimension_numbers = #tpu.dot_dimension_numbers<[2], [1], [1], [2], [0, 0, 0, 1, 1, 2], [0], [0]>} : vector<1x8x8xbf16>, vector<1x8x128xbf16>, vector<1x8x128xf32> -> vector<1x8x128xf32>
    %c0_10 = arith.constant 0 : index
    %c0_11 = arith.constant 0 : index
    %c0_12 = arith.constant 0 : index
    %28 = vector.load %arg4[%c0_10, %c0_11, %c0_12] : memref<1x8x128xf32, #tpu.memory_space<vmem>>, vector<1x8x128xf32>
    tpu.vector_store %arg4[%c0_10, %c0_11, %c0_12], %27 {strides = array<i32>} : memref<1x8x128xf32, #tpu.memory_space<vmem>>, vector<1x8x128xf32>,
    return
  }
  func.func @transform_0(%arg0: i32) -> (i32, i32, i32) {
    %c0_i32 = arith.constant 0 : i32
    %c0_i32_0 = arith.constant 0 : i32
    %c0_i32_1 = arith.constant 0 : i32
    return %arg0, %c0_i32, %c0_i32_0 : i32, i32, i32
  }
  func.func @transform_1(%arg0: i32) -> (i32, i32) {
    %c0_i32 = arith.constant 0 : i32
    %c0_i32_0 = arith.constant 0 : i32
    %c0_i32_1 = arith.constant 0 : i32
    return %c0_i32, %c0_i32_0 : i32, i32
  }
  func.func @transform_2(%arg0: i32) -> (i32, i32) {
    %c0_i32 = arith.constant 0 : i32
    %c0_i32_0 = arith.constant 0 : i32
    %c0_i32_1 = arith.constant 0 : i32
    return %c0_i32, %c0_i32_0 : i32, i32
  }
  func.func @transform_3(%arg0: i32) -> (i32, i32, i32) {
    %c0_i32 = arith.constant 0 : i32
    %c0_i32_0 = arith.constant 0 : i32
    %c0_i32_1 = arith.constant 0 : i32
    return %arg0, %c0_i32, %c0_i32_0 : i32, i32, i32
  }
}

</mosaic_0001>

<bundles_post_ra>
// kernel: tpu_custom_call.1
= control target key start
LH: loop header
LB: loop body
LE: loop exit
PB: predicated region body
PF: predicated region fallthrough
CT: control target
= control target key end

     0   :  { %8 = vsyncpa [#allocation3], 0  ;;  %s945_s0 = inlined_call_operand.hbm [shape: f32[2,8,32], index: 0, kind: input, shape index: {}]   ;;  %s946_s1 = inlined_call_operand.hbm [shape: bf16[32,384], index: 1, kind: input, shape index: {}]   ;;  %s947_s2 = inlined_call_operand.hbm [shape: f32[1,384], index: 2, kind: input, shape index: {}]   ;;  %s948_s3 = inlined_call_operand.hbm [shape: f32[2,8,128], index: 3, kind: output, shape index: {}]  }
   0x1   :  { %10 = vsyncpa [#allocation3 + $0x1], 0 }
   0x2   :  { %11 = vsyncpa [#allocation6], 0 }
   0x3   :  { %12 = vsyncpa [#allocation4], 0 }
   0x4   :  { %14 = vsyncpa [#allocation4 + $0x1], 0  ;;  %s790_s12 = smov 0   ;;  %s792_s13 = smov 0  }
   0x5   :  { %s794_s14 = smov 0   ;;  %s796_s15 = smov 0  }
   0x6 LB: > { %s130_s18 = sshll.u32 %s946_s1, 4  ;;  %s814_s19 = sadd.s32 4294967295, %s764_s15   ;;  %s764_s15 = sphi %s796_s15, %s959_s15   ;;  %s760_s14 = sphi %s794_s14, %s958_s14   ;;  %s756_s13 = sphi %s792_s13, %s957_s13   ;;  %s752_s12 = sphi %s790_s12, %s956_s12   ;;  %s131_s18 = int_to_ptr.hbm [resolvable:$true] %s130_s18 }
   0x7   : > { %p482_p0 = scmp.ge.s32.totalorder %s764_s15, 1  ;;  %p41_p1 = scmp.eq.s32.totalorder %s814_s19, 0 }
   0x8   : > { %p119_p2 = scmp.lt.s32.totalorder %s764_s15, 3  ;;  %s766_s21 = smov [#allocation5]  }
   0x9   : > { %s132_s22 = sshll.u32 %s766_s21, 4  ;;  %s145_s25 = sshll.u32 %s947_s2, 4  ;;  %s133_s22 = int_to_ptr.vmem [resolvable:$true] %s132_s22  ;;  %s146_s25 = int_to_ptr.hbm [resolvable:$true] %s145_s25 }
   0xa   : > { %p819_p3 = pnand %p482_p0, %p119_p2  ;;  %s767_s26 = smov [#allocation7]  }
   0xb   : > { %s147_s27 = sshll.u32 %s767_s26, 4  ;;  %s768_s28 = smov 192   ;;  %s148_s27 = int_to_ptr.vmem [resolvable:$true] %s147_s27 }
   0xc   : > { %p543_p4 = pneg %p819_p3  ;;  %s769_s29 = smov 12  }
   0xd   : > { %s481_s30 = sadd.s32 4294967294, %s764_s15   ;;  %s833_s4 = sadd.s32 1, %s764_s15  }
   0xe   : > { %p544_p6 = pnand %p543_p4, %p41_p1  ;;  %s24_s5 = ssub.s32 %s764_s15, %s833_s4 }
   0xf   : > { %s27_s6 = sadd.s32 1, %s760_s14  ;;  %p25_p7 = scmp.eq.s32.totalorder %s24_s5, 0 }
  0x10   : > { %546 = dma.hbm_to_vmem [thread:$0]  (!%p544_p6), %s131_s18, 768, %s133_s22, [#allocation6], %s768_s28, %s768_s28, %s769_s29  }
  0x11   : > { %549 = dma.hbm_to_vmem [thread:$0]  (!%p544_p6), %s146_s25, 48, %s148_s27, [#allocation6]  }
  0x12   : > { %p34_p8 = scmp.ne.s32.totalorder %s760_s14, %s756_s13  ;;  %p35_p9 = scmp.eq.s32.totalorder %s764_s15, 0 }
  0x13   : > { %p40_p10 = scmp.ne.s32.totalorder %s756_s13, %s752_s12  ;;  %p106_p13 = scmp.eq.s32.totalorder %s814_s19, 1 }
  0x14   : > { %s844_s7 = scalar_select %p25_p7, %s760_s14, %s27_s6  }
  0x15   : > { %p846_p11 = por %p35_p9, %p34_p8  ;;  %p852_p12 = por %p41_p1, %p40_p10 }
  0x16   : > { %p112_p0 = scmp.eq.s32.totalorder %s481_s30, 1  ;;  %p560_p2 = scmp.lt.s32.totalorder %s764_s15, 2 }
  0x17   : > { %s158_s10 = sand.u32 1, %s760_s14   ;;  %p859_p4 = por %p106_p13, %p34_p8 }
  0x18   : > { %p863_p6 = por %p112_p0, %p40_p10  ;;  %s486_s17 = sshll.u32 %s158_s10, 3 }
  0x19   : > { %s487_s18 = sshll.u32 %s764_s15, 3  ;;  %s162_s24 = scalar_lea.vmem [#allocation2], %s486_s17 }
  0x1a   : > { %s166_s23 = scalar_lea.hbm %s945_s0, %s487_s18  ;;  %s170_s25 = sshll.u32 %s162_s24, 4  ;;  %s171_s25 = int_to_ptr.vmem [resolvable:$true] %s170_s25 }
  0x1b   : > { %s168_s26 = sshll.u32 %s166_s23, 4  ;;  %p873_p7 = pnand %p560_p2, %p846_p11  ;;  %s169_s26 = int_to_ptr.hbm [resolvable:$true] %s168_s26 }
  0x1c   : > { %s159_s28 = scalar_lea.sflag [#allocation3], %s158_s10  ;;  %s664_s29 = sshra.s32 %s169_s26, 4  ;;  %s665_s29 = int_to_ptr.hbm [resolvable:$true] %s664_s29 }
  0x1d   : > { %s666_s30 = scalar_lea.hbm %s665_s29, 8  ;;  %p668_p9 = pneg %p873_p7 }
  0x1e   : > { %p667_p8 = scmp.ne.s32.totalorder %s665_s29, %s666_s30  ;;  %s671_s17 = scalar_lea.hbm %s945_s0, 16 }
  0x1f   : > { %p672_p11 = scmp.lt.s32.totalorder %s665_s29, %s945_s0  ;;  %p673_p0 = scmp.lt.s32.totalorder %s671_s17, %s666_s30 }
  0x20   : > { %p669_p10 = pnand %p668_p9, %p667_p8 }
  0x21   : > { %p674_p2 = por %p673_p0, %p672_p11 }
  0x22   : > { %p670_p13 = pneg %p669_p10 }
  0x24   : > { %p675_p5 = pnand %p674_p2, %p670_p13 }
  0x26   : > { %678 = shalt.err (!%p675_p5)
}
  0x27   : > { %553 = dma.hbm_to_vmem [thread:$0]  (!%p873_p7), %s169_s26, 128, %s171_s25, %s159_s28  }
  0x28   : > { %179 = sbr.rel (%p819_p3) target bundleno = 728 (0x2d8), region = 32  ;;  %s890_s10 = sand.u32 (!%p819_p3), 1, %s756_s13  }
  0x29   : > { %s489_s21 = sshll.u32 (!%p819_p3), %s890_s10, 3  ;;  %s182_s22 = scalar_lea.sflag (!%p819_p3), [#allocation3], %s890_s10 }
  0x2a   : > { %s185_s23 = scalar_lea.vmem (!%p819_p3), [#allocation2], %s489_s21 }
  0x2d   : > { %739 = dma.done.wait (%p852_p12), %s182_s22, 128  }
  0x2e   : > { %741 = vsyncadd (%p852_p12), %s182_s22, 4294967168 }
  0x2f   : > { %743 = dma.done.wait (%p41_p1), [#allocation6], 816  }
  0x30   : > { %745 = vsyncadd (%p41_p1), [#allocation6], 4294966480  ;;  %v507_v0 = vld [vmem:[#allocation5 + $0x18] sm:$0xf]  ;;  %v529_v1 = vld [vmem:[#allocation5 + $0x20] sm:$0xf0] }
  0x31   : > { %v528_v2 = vld [vmem:[#allocation5 + $0x1c] sm:$0xf]  ;;  %v508_v3 = vor.u32 %v529_v1, %v507_v0  ;;  %v509_v4 = vld [vmem:[#allocation5 + $0x24] sm:$0xf0]  ;;  %v495_v5 = vld [vmem:[#allocation5] sm:$0xf] }
  0x32   : > { %v526_v6 = vld [vmem:[#allocation5 + $0x8] sm:$0xf0]  ;;  %v512_v7 = vor.u32 %v528_v2, %v509_v4  ;;  %v525_v8 = vld [vmem:[#allocation5 + $0x4] sm:$0xf]  ;;  %v497_v9 = vld [vmem:[#allocation5 + $0xc] sm:$0xf0] }
  0x33   : > { %280 = vmatpush.bf16.msra.mxu0 %v508_v3  ;;  %v496_v10 = vor.u32 %v526_v6, %v495_v5  ;;  %v220_v11 = vld [vmem:[%s185_s23] sm:$0xff]  ;;  %v500_v12 = vor.u32 %v525_v8, %v497_v9  ;;  %vm270_vm0 = vcmask 261120   ;;  %v515_v25 = vld [vmem:[#allocation5 + $0x20] sm:$0xf]  ;;  %v530_v26 = vld [vmem:[#allocation5 + $0x28] sm:$0xf0] }
  0x34   : > { %293 = vmatpush.bf16.msra.mxu1 %v512_v7  ;;  %v221_v13 = vpack.c.bf16 %v220_v11, %v220_v11  ;;  %v230_v14 = vld [vmem:[#allocation7] sm:$0x7]  ;;  %v503_v27 = vld [vmem:[#allocation5 + $0x8] sm:$0xf]  ;;  %v516_v28 = vor.u32 %v530_v26, %v515_v25  ;;  %v527_v29 = vld [vmem:[#allocation5 + $0x10] sm:$0xf0] }
  0x35   : > { %v233_v15 = vperm.slane %v230_v14, 1  ;;  %v232_v17 = vperm.slane %v230_v14, 0  ;;  %v504_v30 = vor.u32 %v527_v29, %v503_v27  ;;  %vm329_vm1 = vcmask 64512   ;;  %s522_s20 = sshll.u32 %s814_s19, 3  ;;  %s218_s26 = scalar_lea.vmem [#allocation8], %s489_s21 }
  0x36   : > { %306 = vmatpush.bf16.msra.mxu2 %v516_v28  ;;  %v234_v41 = vperm.slane %v230_v14, 2  ;;  %vm358_vm2 = vcmask 1043456   ;;  %s387_s25 = scalar_lea.hbm %s948_s3, %s522_s20  ;;  %s389_s27 = sshll.u32 %s218_s26, 4  ;;  %s390_s27 = int_to_ptr.vmem [resolvable:$true] %s389_s27 }
  0x37   : > { %281 = vmatpush.bf16.msra.mxu0 %v496_v10  ;;  %s391_s28 = sshll.u32 %s387_s25, 4  ;;  %s377_s29 = scalar_lea.sflag [#allocation4], %s890_s10  ;;  %s392_s28 = int_to_ptr.hbm [resolvable:$true] %s391_s28 }
  0x38   : > { %294 = vmatpush.bf16.msra.mxu1 %v500_v12  ;;  %s708_s30 = sshra.s32 %s392_s28, 4  ;;  %s714_s17 = scalar_lea.hbm %s948_s3, 16  ;;  %s709_s30 = int_to_ptr.hbm [resolvable:$true] %s708_s30 }
  0x39   : > { %s710_s5 = scalar_lea.hbm %s709_s30, 8  ;;  %p715_p12 = scmp.lt.s32.totalorder %s709_s30, %s948_s3 }
  0x3a   : > { %517 = vmatmul.msk.bf16.vlgmr.msra.gmra.mxu0 %vm270_vm0, %v221_v13  ;;  %307 = vmatpush.bf16.msra.mxu2 %v504_v30  ;;  %p711_p1 = scmp.ne.s32.totalorder %s709_s30, %s710_s5  ;;  %p716_p7 = scmp.lt.s32.totalorder %s714_s17, %s710_s5 }
  0x3b   : > { %518 = vmatmul.msk.bf16.vlgmr.msra.gmra.mxu1 %vm270_vm0, %v221_v13 }
  0x3c   : > { %p712_p3 = pnand %p711_p1, %p859_p4  ;;  %p717_p8 = por %p716_p7, %p715_p12 }
  0x3d   : > { %519 = vmatmul.msk.bf16.vlgmr.msra.gmra.mxu2 %vm270_vm0, %v221_v13 }
  0x3e   : > { %p713_p5 = pneg %p712_p3 }
  0x40   : > { %p718_p9 = pnand %p717_p8, %p713_p5 }
  0xb7   : > { %v283_v16 = vpop.f32.mrf.mxu0 }
  0xb8   : > { %v296_v18 = vpop.f32.mrf.mxu1  ;;  %v284_v21 = vadd.f32 %v283_v16, %v232_v17 }
  0xb9   : > { %v297_v19 = vadd.f32 %v296_v18, %v233_v15 }
  0xba   : > { %v313_v23 = vpack.c.bf16 %v284_v21, %v284_v21 }
  0xbb   : > { %v314_v20 = vpack.c.bf16 %v297_v19, %v297_v19 }
  0xbd   : > { %323 = vmatpush.bf16.xpose.msra.mxu3 %v314_v20 }
  0xbf   : > { %v285_v22 = vpop.f32.mrf.mxu0 }
  0xc0   : > { %v298_v24 = vpop.f32.mrf.mxu1  ;;  %v309_v35 = vpop.f32.mrf.mxu2 }
  0xc1   : > { %v310_v42 = vadd.f32 %v309_v35, %v234_v41 }
  0xc3   : > { %v315_v43 = vpack.c.bf16 %v310_v42, %v310_v42 }
  0xc4   : > { %324 = vmatmul.bf16.vlgmr.msra.gmra.mxu3 %v313_v23 }
  0xc5   : > { %v360_v44 = vsel %vm358_vm2, %v315_v43, 0 }
  0xc6   : > { %369 = vmatpush.bf16.msrb.mxu0 %v360_v44 }
  0xc8   : > { %v311_v38 = vpop.f32.mrf.mxu2 }
 0x147   : > { %v325_v31 = vpop.f32.mrf.mxu3 }
 0x148   : > { %v330_v32 = vsel %vm329_vm1, %v325_v31, -inf }
 0x149   : > { %331 = vmax.xlane.f32.xlu0 %v330_v32 }
 0x14f   : > { %v327_v33 = vpop.f32.mrf.mxu3 }
 0x1bc   : > { %v332_v34 = vpop.xlane.xlu0 %331 }
 0x1bd   : > { %v333_v36 = vsub.f32 %v325_v31, %v332_v34 }
 0x1bf   : > { %v334_v37 = vmul.f32 1.442695, %v333_v36 }
 0x1c1   : > { %600 = vpow2.f32 %v334_v37 }
 0x1c7   : > { %v601_v39 = vpop.eup %600 }
 0x1c8   : > { %v336_v40 = vsel %vm329_vm1, %v601_v39, 0.0 }
 0x1c9   : > { %337 = vadd.xlane.f32.xlu0 %v336_v40 }
 0x23c   : > { %v338_v45 = vpop.xlane.xlu0 %337 }
 0x23d   : > { %602 = vrcp.f32 %v338_v45  ;;  %v350_v49 = vand.u32 2147483648, %v338_v45  ;;  %v348_v51 = vand.u32 2147483647, %v338_v45  ;;  %vm344_vm4 = vweird.f32 %v338_v45 }
 0x23f   : > { %v351_v53 = vor.u32 1.1754944e-38, %v350_v49  ;;  %vm349_vm6 = vcmp.eq.f32.partialorder %v348_v51, 8.507059e+37 }
 0x243   : > { %v603_v46 = vpop.eup %602 }
 0x244   : > { %v340_v47 = vmul.f32 %v603_v46, %v338_v45  ;;  %vm345_vm3 = vweird.f32 %v603_v46 }
 0x245   : > { %vm346_vm5 = vmor %vm344_vm4, %vm345_vm3 }
 0x246   : > { %v341_v48 = vsub.f32 1.0, %v340_v47 }
 0x248   : > { %v342_v50 = vmul.f32 %v603_v46, %v341_v48 }
 0x24a   : > { %v343_v52 = vadd.f32 %v603_v46, %v342_v50 }
 0x24c   : > { %v347_v54 = vsel %vm346_vm5, %v603_v46, %v343_v52 }
 0x24d   : > { %v352_v55 = vsel %vm349_vm6, %v351_v53, %v347_v54 }
 0x24e   : > { %v353_v56 = vmul.f32 %v601_v39, %v352_v55 }
 0x250   : > { %v354_v57 = vpack.c.bf16 %v353_v56, %v353_v56 }
 0x252   : > { %520 = vmatmul.msk.bf16.vlgmr.msrb.gmra.mxu0 %vm329_vm1, %v354_v57 }
 0x2cf   : > { %v371_v58 = vpop.f32.mrf.mxu0 }
 0x2d0   : > { %375 = vst [vmem:[%s218_s26] sm:$0xff] %v371_v58 }
 0x2d1   : > { %721 = shalt.err (!%p718_p9)
}
 0x2d2   : > { %541 = dma.vmem_to_hbm [thread:$0]  (%p859_p4), %s390_s27, 128, %s392_s28, %s377_s29  }
 0x2d7   : > { %v373_v59 = vpop.f32.mrf.mxu0 }
 0x2d8 PF: > { %s403_s10 = sand.u32 1, %s752_s12   ;;  %p955_p10 = scmp.ge.s32.totalorder %s764_s15, 2 }
 0x2d9   : > { %s404_s21 = scalar_lea.sflag [#allocation4], %s403_s10 }
 0x2da   : > { %p555_p13 = pnand %p955_p10, %p863_p6 }
 0x2dc   : > { %p556_p11 = pneg %p555_p13 }
 0x2de   : > { %747 = dma.done.wait (%p556_p11), %s404_s21, 128  }
 0x2df   : > { %749 = vsyncadd (%p556_p11), %s404_s21, 4294967168  ;;  %p17_p0 = scmp.ge.s32.totalorder %s833_s4, 4   ;;  %s956_s12 = smov %s756_s13 }
 0x2e0   : > { %s957_s13 = smov %s760_s14  ;;  %s958_s14 = smov %s844_s7 }
 0x2e1   : > { %s959_s15 = smov %s833_s4  ;;  %19 = sbr.rel (!%p17_p0) target bundleno = 6 (0x6), region = 85 }
 0x2e6   :  { %410 = vsyncpa [#allocation3], 1 }
 0x2e7   :  { %412 = vsyncpa [#allocation3 + $0x1], 1 }
 0x2e8   :  { %413 = vsyncpa [#allocation6], 1 }
 0x2e9   :  { %414 = vsyncpa [#allocation4], 1 }
 0x2ea   :  { %416 = vsyncpa [#allocation4 + $0x1], 1 }

</bundles_post_ra>
